<compile_context>
chip_gen: v6e
topology: v6e:2x2x1
jax: 0.10.0
libtpu: 0.0.40
codegen_flags: <defaults>
</compile_context>

<pallas_src>
import jax
import jax.numpy as jnp
from jax.experimental import pallas as pl
from jax.experimental.pallas import tpu as pltpu

_LANE = 128
_SUBLANE = 8


def _round_up(n, m):
    return ((n + m - 1) // m) * m


def _linear_kernel(x_ref, w_ref, b_ref, o_ref):
    # x_ref: (TB, D), w_ref: (D, C_pad), b_ref: (1, C_pad), o_ref: (TB, C) with C <= C_pad
    acc = jnp.dot(x_ref[...], w_ref[...], preferred_element_type=jnp.float32)
    c = o_ref.shape[-1]
    # Static lane slice: only the true class columns are written back to HBM.
    o_ref[...] = (acc + b_ref[...])[:, :c].astype(o_ref.dtype)


def prepare_classifier_params(weight, bias):
    """Parameter prep, hoisted out of the per-call path (do once).

    weight: (C, D) float32 (PyTorch nn.Linear layout)
    bias:   (C,)   float32
    Returns:
      w_padded: (D, C_pad) float32, lane-dense (C_pad = round_up(C, 128)), zero-padded
      b_padded: (1, C_pad) float32
    """
    C, D = weight.shape
    c_pad = _round_up(C, _LANE)
    w_padded = jnp.zeros((D, c_pad), dtype=jnp.float32).at[:, :C].set(weight.T)
    b_padded = jnp.zeros((1, c_pad), dtype=jnp.float32).at[0, :C].set(bias)
    return w_padded, b_padded


def classifier_forward(x, w_padded, b_padded, num_classes, *, block_b=1024):
    """Forward pass of Classifier: Linear(input_dim, num_classes).

    Args:
      x:         (B, input_dim) float32
      w_padded:  (input_dim, C_pad) float32 from prepare_classifier_params
      b_padded:  (1, C_pad) float32 from prepare_classifier_params
      num_classes: true number of output classes (C <= C_pad)
    Returns:
      (B, num_classes) float32
    """
    B, D = x.shape
    c_pad = w_padded.shape[1]
    C = num_classes

    # Batch tile: sublane-aligned, capped at block_b; force >=2 grid steps when the
    # batch allows it so both TensorCores get work on v7x megacore.
    tb = min(_round_up(B, _SUBLANE), block_b)
    if B >= 2 * _SUBLANE:
        tb = min(tb, max(_SUBLANE, _round_up(pl.cdiv(B, 2), _SUBLANE)))
    grid = (pl.cdiv(B, tb),)  # partial last block handled by Pallas (no jnp.pad copy)

    # VMEM budget: double-buffered x / out tiles + single-buffered weight & bias,
    # 2x headroom, clamped below the physical VMEM of whatever chip we're on.
    vmem_bytes = 4 * (2 * tb * D + D * c_pad + c_pad + 2 * tb * C)
    try:
        vmem_cap = pltpu.get_tpu_info().vmem_capacity_bytes
    except Exception:
        vmem_cap = 64 * 1024 * 1024
    vmem_limit = int(min(max(2 * vmem_bytes, 4 * 1024 * 1024),
                         vmem_cap - 8 * 1024 * 1024))

    cost = pl.CostEstimate(
        flops=2 * B * D * c_pad,
        transcendentals=0,
        bytes_accessed=4 * (B * D + D * c_pad + B * C),
    )

    out = pl.pallas_call(
        _linear_kernel,
        out_shape=jax.ShapeDtypeStruct((B, C), jnp.float32),
        grid_spec=pltpu.PrefetchScalarGridSpec(
            num_scalar_prefetch=0,
            grid=grid,
            in_specs=[
                # x tile streams over batch (default double-buffered).
                pl.BlockSpec((tb, D), lambda i: (i, 0)),
                # Weight / bias are resident: constant index_map, single-buffered.
                pl.BlockSpec((D, c_pad), lambda i: (0, 0),
                             pipeline_mode=pl.Buffered(1)),
                pl.BlockSpec((1, c_pad), lambda i: (0, 0),
                             pipeline_mode=pl.Buffered(1)),
            ],
            # Last dim == full array dim (num_classes), so the (8,128) rule is satisfied.
            out_specs=pl.BlockSpec((tb, C), lambda i: (i, 0)),
        ),
        compiler_params=pltpu.CompilerParams(
            dimension_semantics=("parallel",),
            vmem_limit_bytes=vmem_limit,
        ),
        cost_estimate=cost,
    )(x, w_padded, b_padded)

    return out


if __name__ == "__main__":
    input_dim = 128
    num_classes = 3
    batch = 200  # not a multiple of the tile -> exercises the partial-last-block path

    key = jax.random.PRNGKey(0)
    kx, kw, kb = jax.random.split(key, 3)

    # Deterministic parameter init (mimics nn.Linear's uniform(-1/sqrt(D), 1/sqrt(D)))
    bound = 1.0 / jnp.sqrt(jnp.float32(input_dim))
    weight = jax.random.uniform(kw, (num_classes, input_dim),
                                minval=-bound, maxval=bound, dtype=jnp.float32)
    bias = jax.random.uniform(kb, (num_classes,),
                              minval=-bound, maxval=bound, dtype=jnp.float32)

    x = jax.random.normal(kx, (batch, input_dim), dtype=jnp.float32)

    # Parameter prep is done once (not per call).
    w_padded, b_padded = prepare_classifier_params(weight, bias)

    out = classifier_forward(x, w_padded, b_padded, num_classes)
    out = jax.block_until_ready(out)

    # Reference check against plain JAX (same math as torch: x @ W.T + b)
    ref = x @ weight.T + bias
    assert out.shape == (batch, num_classes)
    assert jnp.allclose(out, ref, atol=1e-5, rtol=1e-5)

    print("KERNEL_OK")
</pallas_src>

<mosaic_0001>
module attributes {stable_mosaic.version = 11 : i64} {
  func.func @_linear_kernel(%arg0: i32, %arg1: memref<104x128xf32, #tpu.memory_space<vmem>>, %arg2: memref<128x128xf32, #tpu.memory_space<vmem>>, %arg3: memref<1x128xf32, #tpu.memory_space<vmem>>, %arg4: memref<104x3xf32, #tpu.memory_space<vmem>>) attributes {dimension_semantics = [#tpu.dimension_semantics<parallel>], iteration_bounds = array<i64: 2>, scalar_prefetch = 0 : i64, scratch_operands = 0 : i64, tpu.core_type = #tpu.core_type<tc>, window_params = [{transform_indices = @transform_0, window_bounds = array<i64: 104, 128>}, {pipeline_mode = #tpu.pipeline_mode<synchronous>, transform_indices = @transform_1, window_bounds = array<i64: 128, 128>}, {pipeline_mode = #tpu.pipeline_mode<synchronous>, transform_indices = @transform_2, window_bounds = array<i64: 1, 128>}, {transform_indices = @transform_3, window_bounds = array<i64: 104, 3>}]} {
    %c0 = arith.constant 0 : index
    %c0_0 = arith.constant 0 : index
    %0 = vector.load %arg1[%c0, %c0_0] : memref<104x128xf32, #tpu.memory_space<vmem>>, vector<104x128xf32>
    %c0_1 = arith.constant 0 : index
    %c0_2 = arith.constant 0 : index
    %1 = vector.load %arg2[%c0_1, %c0_2] : memref<128x128xf32, #tpu.memory_space<vmem>>, vector<128x128xf32>
    %cst = arith.constant dense<0.000000e+00> : vector<104x128xf32>
    %2 = tpu.matmul %0, %1, %cst {dimension_numbers = #tpu.dot_dimension_numbers<[1], [0], [0], [1], [0, 0, 1, 1], [], []>} : vector<104x128xf32>, vector<128x128xf32>, vector<104x128xf32> -> vector<104x128xf32>
    %c0_3 = arith.constant 0 : index
    %c0_4 = arith.constant 0 : index
    %3 = vector.load %arg3[%c0_3, %c0_4] : memref<1x128xf32, #tpu.memory_space<vmem>>, vector<1x128xf32>
    %4 = vector.broadcast %3 : vector<1x128xf32> to vector<104x128xf32>
    %5 = arith.addf %2, %4 : vector<104x128xf32>
    %6 = vector.extract_strided_slice %5 {offsets = [0, 0], sizes = [104, 3], strides = [1, 1]} : vector<104x128xf32> to vector<104x3xf32>
    %c0_5 = arith.constant 0 : index
    %c0_6 = arith.constant 0 : index
    %7 = vector.load %arg4[%c0_5, %c0_6] : memref<104x3xf32, #tpu.memory_space<vmem>>, vector<104x3xf32>
    tpu.vector_store %arg4[%c0_5, %c0_6], %6 {strides = array<i32>} : memref<104x3xf32, #tpu.memory_space<vmem>>, vector<104x3xf32>,
    return
  }
  func.func @transform_0(%arg0: i32) -> (i32, i32) {
    %c0_i32 = arith.constant 0 : i32
    %c0_i32_0 = arith.constant 0 : i32
    return %arg0, %c0_i32 : i32, i32
  }
  func.func @transform_1(%arg0: i32) -> (i32, i32) {
    %c0_i32 = arith.constant 0 : i32
    %c0_i32_0 = arith.constant 0 : i32
    %c0_i32_1 = arith.constant 0 : i32
    return %c0_i32, %c0_i32_0 : i32, i32
  }
  func.func @transform_2(%arg0: i32) -> (i32, i32) {
    %c0_i32 = arith.constant 0 : i32
    %c0_i32_0 = arith.constant 0 : i32
    %c0_i32_1 = arith.constant 0 : i32
    return %c0_i32, %c0_i32_0 : i32, i32
  }
  func.func @transform_3(%arg0: i32) -> (i32, i32) {
    %c0_i32 = arith.constant 0 : i32
    %c0_i32_0 = arith.constant 0 : i32
    return %arg0, %c0_i32 : i32, i32
  }
}

</mosaic_0001>

<bundles_post_ra>
// kernel: tpu_custom_call.1
= control target key start
LH: loop header
LB: loop body
LE: loop exit
PB: predicated region body
PF: predicated region fallthrough
CT: control target
= control target key end

     0   :  { %8 = vsyncpa [#allocation3], 0  ;;  %s1464_s0 = inlined_call_operand.hbm [shape: f32[200,128], index: 0, kind: input, shape index: {}]   ;;  %s1465_s1 = inlined_call_operand.hbm [shape: f32[128,128], index: 1, kind: input, shape index: {}]   ;;  %s1466_s2 = inlined_call_operand.vmem [shape: f32[1,128], index: 2, kind: input, shape index: {}]   ;;  %s1467_s3 = inlined_call_operand.vmem [shape: f32[200,3], index: 3, kind: output, shape index: {}]  }
   0x1   :  { %10 = vsyncpa [#allocation3 + $0x1], 0 }
   0x2   :  { %11 = vsyncpa [#allocation5], 0  ;;  %s1146_s12 = smov 0   ;;  %s1148_s13 = smov 0  }
   0x3   :  { %s1150_s14 = smov 0   ;;  %s1152_s15 = smov 0  }
   0x4 LB: > { %s1165_s16 = sadd.s32 4294967295, %s1084_s15   ;;  %s1168_s17 = sadd.s32 1, %s1084_s15   ;;  %s1084_s15 = sphi %s1152_s15, %s1481_s15   ;;  %s1080_s14 = sphi %s1150_s14, %s1480_s14   ;;  %s1076_s13 = sphi %s1148_s13, %s1479_s13   ;;  %s1072_s12 = sphi %s1146_s12, %s1478_s12  }
   0x5   : > { %s21_s18 = ssub.s32 %s1084_s15, %s1168_s17  ;;  %s24_s19 = sadd.s32 1, %s1080_s14 }
   0x6   : > { %p22_p0 = scmp.eq.s32.totalorder %s21_s18, 0  ;;  %p31_p1 = scmp.ne.s32.totalorder %s1080_s14, %s1076_s13 }
   0x7   : > { %p32_p2 = scmp.eq.s32.totalorder %s1084_s15, 0  ;;  %p37_p3 = scmp.ne.s32.totalorder %s1076_s13, %s1072_s12 }
   0x8   : > { %s1178_s20 = scalar_select %p22_p0, %s1080_s14, %s24_s19  }
   0x9   : > { %p1180_p4 = por %p32_p2, %p31_p1  ;;  %p38_p5 = scmp.eq.s32.totalorder %s1165_s16, 0 }
   0xa   : > { %p103_p6 = scmp.eq.s32.totalorder %s1165_s16, 1  ;;  %p684_p7 = scmp.ge.s32.totalorder %s1084_s15, 1 }
   0xb   : > { %p1189_p8 = por %p38_p5, %p37_p3  ;;  %p116_p9 = scmp.lt.s32.totalorder %s1084_s15, 3 }
   0xc   : > { %p1194_p10 = por %p103_p6, %p31_p1  ;;  %s1118_s25 = smov [#allocation4]  }
   0xd   : > { %s1470_s22 = scalar_select %p1189_p8, 1, 0 }
   0xe   : > { %s1471_s23 = scalar_select %p1194_p10, 1, 0 }
   0xf   : > { %p1198_p11 = pnand %p684_p7, %p116_p9  ;;  %s128_s26 = sshll.u32 %s1118_s25, 4  ;;  %s129_s26 = int_to_ptr.vmem [resolvable:$true] %s128_s26 }
  0x10   : > { %s973_s27 = scalar_lea.vmem %s129_s26, 2048  ;;  %p981_p6 = scmp.lt.s32.totalorder %s129_s26, %s129_s26 }
  0x11   : > { %p848_p12 = pneg %p1198_p11  ;;  %p974_p2 = scmp.ne.s32.totalorder %s129_s26, %s973_s27 }
  0x12   : > { %p982_p8 = scmp.lt.s32.totalorder %s973_s27, %s973_s27 }
  0x13   : > { %p849_p13 = pnand %p848_p12, %p38_p5 }
  0x14   : > { %p983_p10 = por %p982_p8, %p981_p6 }
  0x15   : > { %p964_p0 = pneg %p849_p13 }
  0x17   : > { %p976_p3 = pnand %p974_p2, %p964_p0 }
  0x19   : > { %p977_p1 = pneg %p976_p3 }
  0x1b   : > { %p984_p7 = pnand %p983_p10, %p977_p1 }
  0x1d   : > { %987 = shalt.err (!%p984_p7)
}
  0x1e   : > { %s1119_s28 = smov 128   ;;  %s1120_s29 = smov 8  }
  0x1f   : > { %851 = dma.hbm_to_vmem [thread:$0]  (!%p849_p13), %s1465_s1, 2048, %s129_s26, [#allocation5], %s1119_s28, %s1119_s28, %s1120_s29  }
  0x20   : > { %p686_p9 = scmp.ge.s32.totalorder %s1084_s15, 2 }
  0x22   : > { %141 = sbr.rel (%p686_p9) target bundleno = 73 (0x49), region = 24 }
  0x27   : > { %144 = sbr.rel (!%p1180_p4) target bundleno = 73 (0x49), region = 28  ;;  %s145_s5 = sand.u32 (%p1180_p4), 1, %s1080_s14  }
  0x28   : > { %s150_s6 = smul.u32 (%p1180_p4), 13, %s1084_s15  ;;  %s1217_s11 = scalar_lea.sflag (%p1180_p4), [#allocation3], %s145_s5 }
  0x29   : > { %s841_s7 = smul.u32 (%p1180_p4), 104, %s145_s5 }
  0x2a   : > { %s151_s8 = ssub.s32 (%p1180_p4), 25, %s150_s6 }
  0x2b   : > { %p152_p8 = scmp.lt.s32.totalorder (%p1180_p4), %s151_s8, 13  ;;  %s149_s12 = scalar_lea.vmem (%p1180_p4), [#allocation2], %s841_s7 }
  0x2d   : > { %s1483_s8 = smov (!%p152_p8, %s151_s8), 13 }
  0x2e   : > { %s1214_s9 = sshll.u32 %s1483_s8, 7 }
  0x2f   : > { %s156_s10 = ssub.s32 1664, %s1214_s9 }
  0x30   : > { %157 = vsyncadd %s1217_s11, %s156_s10  ;;  %p688_p4 = scmp.ne.s32.totalorder %s1214_s9, 0  ;;  %s707_s18 = smul.u32 1664, %s1084_s15 }
  0x31   : > { %s162_s19 = sshll.u32 %s149_s12, 4  ;;  %s992_s15 = scalar_lea.hbm %s1464_s0, 3200  ;;  %s1227_s19 = int_to_ptr.vmem [resolvable:$true] %s162_s19 }
  0x32   : > { %s1225_s26 = scalar_lea.hbm %s1464_s0, %s707_s18 }
  0x33   : > { %s988_s27 = scalar_lea.hbm %s1225_s26, %s1214_s9  ;;  %p993_p0 = scmp.lt.s32.totalorder %s1225_s26, %s1464_s0 }
  0x34   : > { %p989_p10 = scmp.ne.s32.totalorder %s1225_s26, %s988_s27  ;;  %p994_p2 = scmp.lt.s32.totalorder %s992_s15, %s988_s27 }
  0x36   : > { %p990_p12 = pnand %p989_p10, %p688_p4  ;;  %p995_p3 = por %p994_p2, %p993_p0 }
  0x38   : > { %p991_p13 = pneg %p990_p12 }
  0x3a   : > { %p996_p1 = pnand %p995_p3, %p991_p13 }
  0x3c   : > { %999 = shalt.err (!%p996_p1)
}
  0x3d   : > { %s1000_s5 = scalar_lea.vmem %s1227_s19, %s1214_s9  ;;  %s1121_s6 = smov [#allocation2]  }
  0x3e   : > { %p1001_p6 = scmp.ne.s32.totalorder %s1227_s19, %s1000_s5  ;;  %s1004_s7 = sshll.u32 %s1121_s6, 4  ;;  %s1005_s7 = int_to_ptr.vmem [resolvable:$false] %s1004_s7 }
  0x3f   : > { %s1006_s8 = scalar_lea.vmem %s1005_s7, 3328  ;;  %p1007_p8 = scmp.lt.s32.totalorder %s1227_s19, %s1005_s7 }
  0x40   : > { %p1002_p7 = pnand %p1001_p6, %p688_p4  ;;  %p1008_p10 = scmp.lt.s32.totalorder %s1006_s8, %s1000_s5 }
  0x42   : > { %p1003_p9 = pneg %p1002_p7  ;;  %p1009_p12 = por %p1008_p10, %p1007_p8 }
  0x44   : > { %p1010_p0 = pnand %p1009_p12, %p1003_p9 }
  0x46   : > { %1013 = shalt.err (!%p1010_p0)
}
  0x47   : > { %s1122_s10 = smov 128   ;;  %s1123_s12 = smov 8  }
  0x48   : > { %168 = dma.hbm_to_vmem [thread:$0]  (%p688_p4), %s1225_s26, %s1214_s9, %s1227_s19, %s1217_s11, %s1122_s10, %s1122_s10, %s1123_s12  }
  0x49 PF: > { %174 = sbr.rel (%p1198_p11) target bundleno = 388 (0x184), region = 32  ;;  %s176_s18 = sand.u32 (!%p1198_p11), 1, %s1076_s13  }
  0x4a   : > { %s1256_s21 = smul.u32 (!%p1198_p11), 104, %s176_s18  ;;  %s177_s25 = scalar_lea.sflag (!%p1198_p11), [#allocation3], %s176_s18 }
  0x4b   : > { %p1473_p13 = scmp.ne.s32.totalorder (!%p1198_p11), %s1470_s22, 0 }
  0x4c   : > { %s1259_s27 = scalar_lea.vmem (!%p1198_p11), [#allocation2], %s1256_s21 }
  0x4e   : > { %1063 = dma.done.wait (%p1473_p13), %s177_s25, 1664  }
  0x4f   : > { %1065 = vsyncadd (%p1473_p13), %s177_s25, 4294965632 }
  0x50   : > { %1067 = dma.done.wait (%p38_p5), [#allocation5], 2048  }
  0x51   : > { %1069 = vsyncadd (%p38_p5), [#allocation5], 4294965248  ;;  %v1124_v0 = vmov 0.0   ;;  %vm1125_vm0 = vmmov 0   ;;  %v244_v1 = vld [vmem:[#allocation4 + $0x78] sm:$0xff]  ;;  %v243_v2 = vld [vmem:[#allocation4 + $0x70] sm:$0xff] }
  0x52   : > { %738 = vmatprep.subr.mxu0 %v1124_v0  ;;  %809 = vmatprep.subr.mxu1 %v1124_v0  ;;  %v242_v3 = vld [vmem:[#allocation4 + $0x68] sm:$0xff]  ;;  %v241_v4 = vld [vmem:[#allocation4 + $0x60] sm:$0xff]  ;;  %v240_v5 = vld [vmem:[#allocation4 + $0x58] sm:$0xff]  ;;  %vm382_vm1 = vcmask 23552   ;;  %s1344_s9 = scalar_lea.vmem [#allocation6], %s1256_s21   ;;  %p1474_p5 = scmp.ne.s32.totalorder %s1471_s23, 0 }
  0x53   : > { %770 = vmatprep.mubr.msk.f32.mxu0 %vm1125_vm0, %v1124_v0  ;;  %791 = vmatprep.mubr.msk.f32.mxu1 %vm1125_vm0, %v1124_v0  ;;  %v239_v6 = vld [vmem:[#allocation4 + $0x50] sm:$0xff]  ;;  %v238_v7 = vld [vmem:[#allocation4 + $0x48] sm:$0xff]  ;;  %v237_v8 = vld [vmem:[#allocation4 + $0x40] sm:$0xff]  ;;  %s403_s11 = smul.u32 (%p1474_p5), 13, %s1165_s16 }
  0x54   : > { %739 = vmatpush3.msra.mxu0 %v244_v1  ;;  %825 = vmatpush3.msra.mxu1 %v244_v1  ;;  %v236_v9 = vld [vmem:[#allocation4 + $0x38] sm:$0xff]  ;;  %v235_v10 = vld [vmem:[#allocation4 + $0x30] sm:$0xff]  ;;  %v234_v11 = vld [vmem:[#allocation4 + $0x28] sm:$0xff]  ;;  %s708_s19 = smul.u32 (%p1474_p5), 104, %s1165_s16 }
  0x55   : > { %740 = vmatprep.subr.mxu0 %v1124_v0  ;;  %810 = vmatprep.subr.mxu1 %v1124_v0  ;;  %v233_v12 = vld [vmem:[#allocation4 + $0x20] sm:$0xff]  ;;  %v232_v13 = vld [vmem:[#allocation4 + $0x18] sm:$0xff]  ;;  %v231_v14 = vld [vmem:[#allocation4 + $0x10] sm:$0xff]  ;;  %s404_s26 = ssub.s32 (%p1474_p5), 25, %s403_s11 }
  0x56   : > { %741 = vmatpush3.msra.mxu0 %v243_v2  ;;  %826 = vmatpush3.msra.mxu1 %v243_v2  ;;  %v230_v15 = vld [vmem:[#allocation4 + $0x8] sm:$0xff]  ;;  %v229_v16 = vld [vmem:[#allocation4] sm:$0xff]  ;;  %v216_v17 = vld [vmem:[%s1259_s27] sm:$0xff]  ;;  %p405_p11 = scmp.lt.s32.totalorder (%p1474_p5), %s404_s26, 13  ;;  %s1379_s15 = scalar_lea.vmem (%p1474_p5), %s1467_s3, %s708_s19  }
  0x57   : > { %742 = vmatprep.subr.mxu0 %v1124_v0  ;;  %811 = vmatprep.subr.mxu1 %v1124_v0  ;;  %v223_v18 = vld [vmem:[%s1259_s27 + $0x38] sm:$0xff]  ;;  %v217_v19 = vld [vmem:[%s1259_s27 + $0x8] sm:$0xff]  ;;  %v224_v20 = vld [vmem:[%s1259_s27 + $0x40] sm:$0xff] }
  0x58   : > { %743 = vmatpush3.msra.mxu0 %v242_v3  ;;  %827 = vmatpush3.msra.mxu1 %v242_v3  ;;  %v218_v21 = vld [vmem:[%s1259_s27 + $0x10] sm:$0xff]  ;;  %v225_v22 = vld [vmem:[%s1259_s27 + $0x48] sm:$0xff]  ;;  %v219_v23 = vld [vmem:[%s1259_s27 + $0x18] sm:$0xff] }
  0x59   : > { %744 = vmatprep.subr.mxu0 %v1124_v0  ;;  %812 = vmatprep.subr.mxu1 %v1124_v0  ;;  %v226_v24 = vld [vmem:[%s1259_s27 + $0x50] sm:$0xff]  ;;  %v220_v25 = vld [vmem:[%s1259_s27 + $0x20] sm:$0xff]  ;;  %v227_v26 = vld [vmem:[%s1259_s27 + $0x58] sm:$0xff] }
  0x5a   : > { %745 = vmatpush3.msra.mxu0 %v241_v4  ;;  %828 = vmatpush3.msra.mxu1 %v241_v4  ;;  %v221_v27 = vld [vmem:[%s1259_s27 + $0x28] sm:$0xff]  ;;  %v228_v28 = vld [vmem:[%s1259_s27 + $0x60] sm:$0xff]  ;;  %v222_v29 = vld [vmem:[%s1259_s27 + $0x30] sm:$0xff] }
  0x5b   : > { %746 = vmatprep.subr.mxu0 %v1124_v0  ;;  %813 = vmatprep.subr.mxu1 %v1124_v0  ;;  %v694_v30 = vld [vmem:[%s1466_s2] ss:$0 sm:$0xff] }
  0x5c   : > { %747 = vmatpush3.msra.mxu0 %v240_v5  ;;  %829 = vmatpush3.msra.mxu1 %v240_v5 }
  0x5d   : > { %748 = vmatprep.subr.mxu0 %v1124_v0  ;;  %814 = vmatprep.subr.mxu1 %v1124_v0 }
  0x5e   : > { %749 = vmatpush3.msra.mxu0 %v239_v6  ;;  %830 = vmatpush3.msra.mxu1 %v239_v6 }
  0x5f   : > { %750 = vmatprep.subr.mxu0 %v1124_v0  ;;  %815 = vmatprep.subr.mxu1 %v1124_v0 }
  0x60   : > { %751 = vmatpush3.msra.mxu0 %v238_v7  ;;  %831 = vmatpush3.msra.mxu1 %v238_v7 }
  0x61   : > { %752 = vmatprep.subr.mxu0 %v1124_v0  ;;  %816 = vmatprep.subr.mxu1 %v1124_v0 }
  0x62   : > { %753 = vmatpush3.msra.mxu0 %v237_v8  ;;  %832 = vmatpush3.msra.mxu1 %v237_v8 }
  0x63   : > { %754 = vmatprep.subr.mxu0 %v1124_v0  ;;  %817 = vmatprep.subr.mxu1 %v1124_v0 }
  0x64   : > { %755 = vmatpush3.msra.mxu0 %v236_v9  ;;  %833 = vmatpush3.msra.mxu1 %v236_v9 }
  0x65   : > { %756 = vmatprep.subr.mxu0 %v1124_v0  ;;  %818 = vmatprep.subr.mxu1 %v1124_v0 }
  0x66   : > { %757 = vmatpush3.msra.mxu0 %v235_v10  ;;  %834 = vmatpush3.msra.mxu1 %v235_v10 }
  0x67   : > { %758 = vmatprep.subr.mxu0 %v1124_v0  ;;  %819 = vmatprep.subr.mxu1 %v1124_v0 }
  0x68   : > { %759 = vmatpush3.msra.mxu0 %v234_v11  ;;  %835 = vmatpush3.msra.mxu1 %v234_v11 }
  0x69   : > { %760 = vmatprep.subr.mxu0 %v1124_v0  ;;  %820 = vmatprep.subr.mxu1 %v1124_v0 }
  0x6a   : > { %761 = vmatpush3.msra.mxu0 %v233_v12  ;;  %836 = vmatpush3.msra.mxu1 %v233_v12 }
  0x6b   : > { %762 = vmatprep.subr.mxu0 %v1124_v0  ;;  %821 = vmatprep.subr.mxu1 %v1124_v0 }
  0x6c   : > { %763 = vmatpush3.msra.mxu0 %v232_v13  ;;  %837 = vmatpush3.msra.mxu1 %v232_v13 }
  0x6d   : > { %764 = vmatprep.subr.mxu0 %v1124_v0  ;;  %822 = vmatprep.subr.mxu1 %v1124_v0 }
  0x6e   : > { %765 = vmatpush3.msra.mxu0 %v231_v14  ;;  %838 = vmatpush3.msra.mxu1 %v231_v14 }
  0x6f   : > { %766 = vmatprep.subr.mxu0 %v1124_v0  ;;  %823 = vmatprep.subr.mxu1 %v1124_v0 }
  0x70   : > { %767 = vmatpush3.msra.mxu0 %v230_v15  ;;  %839 = vmatpush3.msra.mxu1 %v230_v15 }
  0x71   : > { %768 = vmatprep.subr.mxu0 %v1124_v0  ;;  %824 = vmatprep.subr.mxu1 %v1124_v0 }
  0x72   : > { %769 = vmatpush3.msra.mxu0 %v229_v16  ;;  %840 = vmatpush3.msra.mxu1 %v229_v16 }
  0x73   : > { %771 = vmatmul.mubr.f32.vlgmr.msra.gmra.mxu0 %v216_v17  ;;  %792 = vmatmul.mubr.f32.vlgmr.msra.gmra.mxu1 %v223_v18 }
  0x74   : > { %773 = vmatprep.mubr.msk.f32.mxu0 %vm1125_vm0, %v1124_v0  ;;  %794 = vmatprep.mubr.msk.f32.mxu1 %vm1125_vm0, %v1124_v0 }
  0x77   : > { %774 = vmatmul.mubr.f32.gmra.mxu0 %v217_v19  ;;  %795 = vmatmul.mubr.f32.gmra.mxu1 %v224_v20 }
  0x78   : > { %776 = vmatprep.mubr.msk.f32.mxu0 %vm1125_vm0, %v1124_v0  ;;  %797 = vmatprep.mubr.msk.f32.mxu1 %vm1125_vm0, %v1124_v0 }
  0x7b   : > { %777 = vmatmul.mubr.f32.gmra.mxu0 %v218_v21  ;;  %798 = vmatmul.mubr.f32.gmra.mxu1 %v225_v22 }
  0x7c   : > { %779 = vmatprep.mubr.msk.f32.mxu0 %vm1125_vm0, %v1124_v0  ;;  %800 = vmatprep.mubr.msk.f32.mxu1 %vm1125_vm0, %v1124_v0 }
  0x7f   : > { %780 = vmatmul.mubr.f32.gmra.mxu0 %v219_v23  ;;  %801 = vmatmul.mubr.f32.gmra.mxu1 %v226_v24 }
  0x80   : > { %782 = vmatprep.mubr.msk.f32.mxu0 %vm1125_vm0, %v1124_v0  ;;  %803 = vmatprep.mubr.msk.f32.mxu1 %vm1125_vm0, %v1124_v0 }
  0x83   : > { %783 = vmatmul.mubr.f32.gmra.mxu0 %v220_v25  ;;  %804 = vmatmul.mubr.f32.gmra.mxu1 %v227_v26 }
  0x84   : > { %785 = vmatprep.mubr.msk.f32.mxu0 %vm1125_vm0, %v1124_v0  ;;  %806 = vmatprep.mubr.msk.f32.mxu1 %vm1125_vm0, %v1124_v0 }
  0x87   : > { %786 = vmatmul.mubr.f32.gmra.mxu0 %v221_v27  ;;  %807 = vmatmul.mubr.f32.gmra.mxu1 %v228_v28 }
  0x88   : > { %788 = vmatprep.mubr.msk.f32.mxu0 %vm1125_vm0, %v1124_v0 }
  0x8b   : > { %789 = vmatmul.mubr.f32.gmra.mxu0 %v222_v29 }
 0x133   : > { %v318_v31 = vpop.f32.mrf.mxu0  ;;  %v353_v32 = vpop.f32.mrf.mxu1 }
 0x134   : > { %v319_v33 = vadd.f32 %v694_v30, %v318_v31  ;;  %v354_v34 = vadd.f32 %v694_v30, %v353_v32 }
 0x135   : > { %v772_v35 = vpop.f32.mrf.mxu0  ;;  %v793_v36 = vpop.f32.mrf.mxu1 }
 0x136   : > { %383 = vst.msk [vmem:[%s1344_s9] sm:$0xff] %vm382_vm1, %v319_v33  ;;  %390 = vst.msk [vmem:[%s1344_s9 + $0x38] sm:$0xff] %vm382_vm1, %v354_v34 }
 0x137   : > { %v323_v37 = vpop.f32.mrf.mxu0  ;;  %v358_v38 = vpop.f32.mrf.mxu1 }
 0x138   : > { %v324_v39 = vadd.f32 %v694_v30, %v323_v37  ;;  %v359_v40 = vadd.f32 %v694_v30, %v358_v38 }
 0x139   : > { %v775_v41 = vpop.f32.mrf.mxu0  ;;  %v796_v42 = vpop.f32.mrf.mxu1 }
 0x13a   : > { %384 = vst.msk [vmem:[%s1344_s9 + $0x8] sm:$0xff] %vm382_vm1, %v324_v39  ;;  %391 = vst.msk [vmem:[%s1344_s9 + $0x40] sm:$0xff] %vm382_vm1, %v359_v40 }
 0x13b   : > { %v328_v43 = vpop.f32.mrf.mxu0  ;;  %v363_v44 = vpop.f32.mrf.mxu1 }
 0x13c   : > { %v329_v45 = vadd.f32 %v694_v30, %v328_v43  ;;  %v364_v46 = vadd.f32 %v694_v30, %v363_v44 }
 0x13d   : > { %v778_v47 = vpop.f32.mrf.mxu0  ;;  %v799_v48 = vpop.f32.mrf.mxu1 }
 0x13e   : > { %385 = vst.msk [vmem:[%s1344_s9 + $0x10] sm:$0xff] %vm382_vm1, %v329_v45  ;;  %392 = vst.msk [vmem:[%s1344_s9 + $0x48] sm:$0xff] %vm382_vm1, %v364_v46 }
 0x13f   : > { %v333_v49 = vpop.f32.mrf.mxu0  ;;  %v368_v50 = vpop.f32.mrf.mxu1 }
 0x140   : > { %v334_v51 = vadd.f32 %v694_v30, %v333_v49  ;;  %v369_v52 = vadd.f32 %v694_v30, %v368_v50 }
 0x141   : > { %v781_v53 = vpop.f32.mrf.mxu0  ;;  %v802_v54 = vpop.f32.mrf.mxu1 }
 0x142   : > { %386 = vst.msk [vmem:[%s1344_s9 + $0x18] sm:$0xff] %vm382_vm1, %v334_v51  ;;  %393 = vst.msk [vmem:[%s1344_s9 + $0x50] sm:$0xff] %vm382_vm1, %v369_v52 }
 0x143   : > { %v338_v55 = vpop.f32.mrf.mxu0  ;;  %v373_v56 = vpop.f32.mrf.mxu1 }
 0x144   : > { %v339_v57 = vadd.f32 %v694_v30, %v338_v55  ;;  %v374_v58 = vadd.f32 %v694_v30, %v373_v56 }
 0x145   : > { %v784_v59 = vpop.f32.mrf.mxu0  ;;  %v805_v60 = vpop.f32.mrf.mxu1 }
 0x146   : > { %387 = vst.msk [vmem:[%s1344_s9 + $0x20] sm:$0xff] %vm382_vm1, %v339_v57  ;;  %394 = vst.msk [vmem:[%s1344_s9 + $0x58] sm:$0xff] %vm382_vm1, %v374_v58 }
 0x147   : > { %v343_v61 = vpop.f32.mrf.mxu0  ;;  %v378_v62 = vpop.f32.mrf.mxu1 }
 0x148   : > { %v344_v63 = vadd.f32 %v694_v30, %v343_v61  ;;  %v379_v0 = vadd.f32 %v694_v30, %v378_v62 }
 0x149   : > { %v787_v1 = vpop.f32.mrf.mxu0  ;;  %v808_v2 = vpop.f32.mrf.mxu1 }
 0x14a   : > { %388 = vst.msk [vmem:[%s1344_s9 + $0x28] sm:$0xff] %vm382_vm1, %v344_v63  ;;  %395 = vst.msk [vmem:[%s1344_s9 + $0x60] sm:$0xff] %vm382_vm1, %v379_v0  ;;  %402 = sbr.rel (!%p1474_p5) target bundleno = 388 (0x184), region = 44 }
 0x14b   : > { %v348_v3 = vpop.f32.mrf.mxu0 }
 0x14c   : > { %v349_v4 = vadd.f32 %v694_v30, %v348_v3 }
 0x14d   : > { %v790_v5 = vpop.f32.mrf.mxu0 }
 0x14e   : > { %389 = vst.msk [vmem:[%s1344_s9 + $0x30] sm:$0xff] %vm382_vm1, %v349_v4 }
 0x14f   : > { %s1485_s26 = smov (!%p405_p11, %s404_s26), 13 }
 0x150   : > { %s695_s30 = sshll.u32 %s1485_s26, 7 }
 0x151   : > { %p698_p4 = scmp.eq.s32.totalorder %s695_s30, 0 }
 0x152   : > { %958 = sdivrem.u32 (!%p698_p4), %s1485_s26, 13 }
 0x153   : > { %413 = sbr.rel (%p698_p4) target bundleno = 388 (0x184), region = 48 }
 0x15b   : > { %s1385_s23 = spop.drf %958 }
 0x15c   : > { %p699_p2 = scmp.le.s32.totalorder %s1385_s23, 0 }
 0x15d   : > { %s1475_s16 = smov (!%p699_p2), %s1379_s15  ;;  %s1476_s4 = smov (!%p699_p2), %s1344_s9 }
 0x15e   : > { %627 = sbr.rel (%p699_p2) target bundleno = 363 (0x16b), region = 130  ;;  %s1394_s5 = smov (!%p699_p2), 0  }
 0x15f   : > { %s1396_s6 = smov (!%p699_p2), 0  }
 0x163 LB: >> { %v502_v6 = vld [vmem:[%s1092_s4] sm:$0xff]  ;;  %v504_v7 = vld [vmem:[%s1092_s4 + $0x8] sm:$0xff]  ;;  %v506_v8 = vld [vmem:[%s1092_s4 + $0x10] sm:$0xff]  ;;  %s528_s7 = sadd.s32 1, %s1096_s5  ;;  %s496_s6 = sadd.s32 1, %s1100_s6   ;;  %s1100_s6 = sphi %s1396_s6, %s496_s6   ;;  %s1096_s5 = sphi %s1394_s5, %s1477_s5   ;;  %s1092_s4 = sphi %s1476_s4, %s533_s4   ;;  %s1088_s16 = sphi %s1475_s16, %s534_s16  }
 0x164   : >> { %503 = vst [vmem:[%s1088_s16] sm:$0xff] %v502_v6  ;;  %505 = vst [vmem:[%s1088_s16 + $0x8] sm:$0xff] %v504_v7  ;;  %v508_v9 = vld [vmem:[%s1092_s4 + $0x18] sm:$0xff]  ;;  %v510_v10 = vld [vmem:[%s1092_s4 + $0x20] sm:$0xff]  ;;  %p529_p3 = scmp.ge.s32.totalorder %s528_s7, %s1385_s23  ;;  %p495_p1 = scmp.ge.s32.totalorder %s496_s6, %s1385_s23 }
 0x165   : >> { %507 = vst [vmem:[%s1088_s16 + $0x10] sm:$0xff] %v506_v8  ;;  %v512_v11 = vld [vmem:[%s1092_s4 + $0x28] sm:$0xff]  ;;  %509 = vst [vmem:[%s1088_s16 + $0x18] sm:$0xff] %v508_v9  ;;  %v514_v12 = vld [vmem:[%s1092_s4 + $0x30] sm:$0xff] }
 0x166   : >> { %511 = vst [vmem:[%s1088_s16 + $0x20] sm:$0xff] %v510_v10  ;;  %513 = vst [vmem:[%s1088_s16 + $0x28] sm:$0xff] %v512_v11  ;;  %v516_v13 = vld [vmem:[%s1092_s4 + $0x38] sm:$0xff]  ;;  %v518_v14 = vld [vmem:[%s1092_s4 + $0x40] sm:$0xff]  ;;  %s1487_s7 = smov (%p529_p3, %s528_s7), 0  ;;  %498 = sbr.rel (!%p495_p1) target bundleno = 355 (0x163), region = 136 }
 0x167   : >> { %515 = vst [vmem:[%s1088_s16 + $0x30] sm:$0xff] %v514_v12  ;;  %517 = vst [vmem:[%s1088_s16 + $0x38] sm:$0xff] %v516_v13  ;;  %v520_v15 = vld [vmem:[%s1092_s4 + $0x48] sm:$0xff]  ;;  %v522_v16 = vld [vmem:[%s1092_s4 + $0x50] sm:$0xff]  ;;  %s531_s8 = smul.u32 104, %s1487_s7  ;;  %s1477_s5 = smov %s1487_s7 }
 0x168   : >> { %519 = vst [vmem:[%s1088_s16 + $0x40] sm:$0xff] %v518_v14  ;;  %v524_v17 = vld [vmem:[%s1092_s4 + $0x58] sm:$0xff]  ;;  %521 = vst [vmem:[%s1088_s16 + $0x48] sm:$0xff] %v520_v15  ;;  %v526_v18 = vld [vmem:[%s1092_s4 + $0x60] sm:$0xff] }
 0x169   : >> { %523 = vst [vmem:[%s1088_s16 + $0x50] sm:$0xff] %v522_v16  ;;  %525 = vst [vmem:[%s1088_s16 + $0x58] sm:$0xff] %v524_v17  ;;  %s533_s4 = scalar_lea.vmem %s1344_s9, %s531_s8 [#allocation6]  }
 0x16a   : >> { %527 = vst [vmem:[%s1088_s16 + $0x60] sm:$0xff] %v526_v18  ;;  %s534_s16 = scalar_lea.vmem %s1379_s15, %s531_s8  }
 0x16b PF: > { %960 = sdivrem.u32 %s1485_s26, 13 }
 0x16c   : > { %s700_s10 = smul.u32 104, %s1385_s23 }
 0x16e   : > { %s539_s12 = scalar_lea.vmem %s1344_s9, %s700_s10 [#allocation6]   ;;  %s541_s18 = scalar_lea.vmem %s1379_s15, %s700_s10  }
 0x174   : > { %s961_s21 = spop.drf %960 }
 0x175   : > { %p702_p6 = scmp.le.s32.totalorder %s961_s21, 0 }
 0x176   : > { %s1102_s25 = smov (!%p702_p6), %s541_s18   ;;  %s1106_s27 = smov (!%p702_p6), %s539_s12  }
 0x177   : > { %641 = sbr.rel (%p702_p6) target bundleno = 388 (0x184), region = 141  ;;  %s1110_s22 = smov (!%p702_p6), 0  }
 0x178   : > { %s1114_s24 = smov (!%p702_p6), 0  }
 0x17c LB: >> { %v551_v19 = vld [vmem:[%s1108_s27] sm:$0xff]  ;;  %s553_s11 = sadd.s32 1, %s1112_s22  ;;  %s545_s24 = sadd.s32 1, %s1116_s24   ;;  %s1116_s24 = sphi %s1114_s24, %s545_s24   ;;  %s1112_s22 = sphi %s1110_s22, %s1111_s22   ;;  %s1108_s27 = sphi %s1106_s27, %s558_s27   ;;  %s1104_s25 = sphi %s1102_s25, %s559_s25  }
 0x17d   : >> { %552 = vst [vmem:[%s1104_s25] sm:$0xff] %v551_v19  ;;  %p554_p7 = scmp.ge.s32.totalorder %s553_s11, %s961_s21  ;;  %p544_p9 = scmp.ge.s32.totalorder %s545_s24, %s961_s21 }
 0x17f   : >> { %s1489_s11 = smov (%p554_p7, %s553_s11), 0  ;;  %547 = sbr.rel (!%p544_p9) target bundleno = 380 (0x17c), region = 147 }
 0x180   : >> { %s703_s9 = sshll.u32 %s1489_s11, 3  ;;  %s1111_s22 = smov %s1489_s11  }
 0x181   : >> { %s558_s27 = scalar_lea.vmem %s539_s12, %s703_s9 [#allocation6]   ;;  %s559_s25 = scalar_lea.vmem %s541_s18, %s703_s9  }
 0x184 PF: > { %p14_p8 = scmp.ge.s32.totalorder %s1168_s17, 4   ;;  %s1478_s12 = smov %s1076_s13 }
 0x185   : > { %s1479_s13 = smov %s1080_s14  ;;  %s1480_s14 = smov %s1178_s20 }
 0x186   : > { %s1481_s15 = smov %s1168_s17  ;;  %16 = sbr.rel (!%p14_p8) target bundleno = 4 (0x4), region = 158 }
 0x18b   :  { %575 = vsyncpa [#allocation3], 1 }
 0x18c   :  { %577 = vsyncpa [#allocation3 + $0x1], 1 }
 0x18d   :  { %578 = vsyncpa [#allocation5], 1 }

</bundles_post_ra>
